<compile_context>
chip_gen: v6e
topology: v6e:2x2x1
jax: 0.10.0
libtpu: 0.0.40
codegen_flags: <defaults>
</compile_context>

<pallas_src>
import functools

import jax
import jax.numpy as jnp
from jax.experimental import pallas as pl
from jax.experimental.pallas import tpu as pltpu

_LANES = 128


def _weird_leaky_relu_kernel(x_ref, o_ref, *, alpha_positive, alpha_negative):
    """Elementwise: where(x > 0, alpha_positive * x, alpha_negative * x)."""
    x = x_ref[...]
    o_ref[...] = jnp.where(x > 0, alpha_positive * x, alpha_negative * x)


def weird_leaky_relu_forward(x, *, alpha_positive=1.0, alpha_negative=0.001,
                             block_rows=4096):
    """Apply WeirdLeakyReLU to a tensor of any shape via a Pallas TPU kernel."""
    orig_shape = x.shape
    orig_dtype = x.dtype
    total = x.size

    if total == 0:
        return x

    rows = pl.cdiv(total, _LANES)
    pad = rows * _LANES - total

    flat = x.reshape(-1)
    if pad:
        # Rare fallback: one jnp.pad on the flat array.
        flat = jnp.pad(flat, (0, pad))
    x2d = flat.reshape(rows, _LANES)

    # Tile selection:
    #  - small input  -> one block covering the whole array (always legal),
    #  - large input  -> fixed (block_rows, 128) tiles; block_rows is a
    #    multiple of 8 so the (8,128) block-shape rule holds, ragged last
    #    block is masked by Pallas.
    block_rows = max(8, (int(block_rows) // 8) * 8)
    if rows <= block_rows:
        eff_block_rows = rows
        grid_rows = 1
    else:
        eff_block_rows = block_rows
        grid_rows = pl.cdiv(rows, eff_block_rows)

    kernel = functools.partial(
        _weird_leaky_relu_kernel,
        alpha_positive=float(alpha_positive),   # static constants baked into
        alpha_negative=float(alpha_negative),   # the trace
    )

    dtype_bytes = jnp.dtype(orig_dtype).itemsize
    cost = pl.CostEstimate(
        flops=2 * total,
        transcendentals=0,
        bytes_accessed=2 * total * dtype_bytes,
    )

    out2d = pl.pallas_call(
        kernel,
        out_shape=jax.ShapeDtypeStruct(x2d.shape, orig_dtype),
        grid=(grid_rows,),
        in_specs=[pl.BlockSpec((eff_block_rows, _LANES), lambda i: (i, 0))],
        out_specs=pl.BlockSpec((eff_block_rows, _LANES), lambda i: (i, 0)),
        compiler_params=pltpu.CompilerParams(
            dimension_semantics=("parallel",)),   # megacore / 2-TC split
        cost_estimate=cost,
    )(x2d)

    if pad:
        return out2d.reshape(-1)[:total].reshape(orig_shape)
    return out2d.reshape(orig_shape)


def weird_leaky_relu_reference(x, *, alpha_positive, alpha_negative):
    """Pure-JAX reference matching the PyTorch forward exactly."""
    return (alpha_positive * x * (x > 0).astype(x.dtype)
            + alpha_negative * x * (x <= 0).astype(x.dtype))


if __name__ == "__main__":
    key = jax.random.PRNGKey(0)
    # NCHW conv-style input, small shape (2*4*16*16 = 2048 elements).
    x = jax.random.normal(key, (2, 4, 16, 16), dtype=jnp.float32)

    alpha_positive = 1.0
    alpha_negative = 0.001

    out = weird_leaky_relu_forward(
        x, alpha_positive=alpha_positive, alpha_negative=alpha_negative)
    out = jax.block_until_ready(out)

    ref = weird_leaky_relu_reference(
        x, alpha_positive=alpha_positive, alpha_negative=alpha_negative)

    assert out.shape == x.shape and out.dtype == x.dtype
    assert jnp.allclose(out, ref, atol=1e-6, rtol=1e-6), "mismatch vs reference"

    # Also exercise a non-multiple-of-128 shape (ragged / pad path).
    x2 = jax.random.normal(jax.random.PRNGKey(1), (3, 5, 7), dtype=jnp.float32)
    out2 = jax.block_until_ready(
        weird_leaky_relu_forward(
            x2, alpha_positive=alpha_positive, alpha_negative=alpha_negative))
    ref2 = weird_leaky_relu_reference(
        x2, alpha_positive=alpha_positive, alpha_negative=alpha_negative)
    assert jnp.allclose(out2, ref2, atol=1e-6, rtol=1e-6), "ragged mismatch"

    print("KERNEL_OK")
</pallas_src>

<mosaic_0001>
module attributes {stable_mosaic.version = 11 : i64} {
  func.func @_weird_leaky_relu_kernel(%arg0: i32, %arg1: memref<16x128xf32, #tpu.memory_space<vmem>>, %arg2: memref<16x128xf32, #tpu.memory_space<vmem>>) attributes {dimension_semantics = [#tpu.dimension_semantics<parallel>], iteration_bounds = array<i64: 1>, scalar_prefetch = 0 : i64, scratch_operands = 0 : i64, tpu.core_type = #tpu.core_type<tc>, window_params = [{transform_indices = @transform_0, window_bounds = array<i64: 16, 128>}, {transform_indices = @transform_1, window_bounds = array<i64: 16, 128>}]} {
    %c0 = arith.constant 0 : index
    %c0_0 = arith.constant 0 : index
    %0 = vector.load %arg1[%c0, %c0_0] : memref<16x128xf32, #tpu.memory_space<vmem>>, vector<16x128xf32>
    %cst = arith.constant 0.000000e+00 : f32
    %1 = vector.broadcast %cst : f32 to vector<16x128xf32>
    %2 = arith.cmpf ogt, %0, %1 : vector<16x128xf32>
    %cst_1 = arith.constant 1.000000e+00 : f32
    %3 = vector.broadcast %cst_1 : f32 to vector<16x128xf32>
    %4 = arith.mulf %3, %0 : vector<16x128xf32>
    %cst_2 = arith.constant 1.000000e-03 : f32
    %5 = vector.broadcast %cst_2 : f32 to vector<16x128xf32>
    %6 = arith.mulf %5, %0 : vector<16x128xf32>
    %7 = arith.select %2, %4, %6 : vector<16x128xi1>, vector<16x128xf32>
    %c0_3 = arith.constant 0 : index
    %c0_4 = arith.constant 0 : index
    %8 = vector.load %arg2[%c0_3, %c0_4] : memref<16x128xf32, #tpu.memory_space<vmem>>, vector<16x128xf32>
    tpu.vector_store %arg2[%c0_3, %c0_4], %7 {strides = array<i32>} : memref<16x128xf32, #tpu.memory_space<vmem>>, vector<16x128xf32>,
    return
  }
  func.func @transform_0(%arg0: i32) -> (i32, i32) {
    %c0_i32 = arith.constant 0 : i32
    %c0_i32_0 = arith.constant 0 : i32
    return %arg0, %c0_i32 : i32, i32
  }
  func.func @transform_1(%arg0: i32) -> (i32, i32) {
    %c0_i32 = arith.constant 0 : i32
    %c0_i32_0 = arith.constant 0 : i32
    return %arg0, %c0_i32 : i32, i32
  }
}

</mosaic_0001>

<bundles_post_ra>
// kernel: tpu_custom_call.1
= control target key start
LH: loop header
LB: loop body
LE: loop exit
PB: predicated region body
PF: predicated region fallthrough
CT: control target
= control target key end

     0   :  { %6 = vsyncpa [#allocation3], 0  ;;  %s118_s0 = inlined_call_operand.hbm [shape: f32[16,128], index: 0, kind: input, shape index: {}]   ;;  %s119_s1 = inlined_call_operand.hbm [shape: f32[16,128], index: 1, kind: output, shape index: {}]  }
   0x1   :  { %7 = vsyncpa [#allocation4], 0  ;;  %s98_s6 = smov [#allocation2]  }
   0x2   :  { %s13_s7 = sshll.u32 %s98_s6, 4  ;;  %s14_s7 = int_to_ptr.vmem [resolvable:$true] %s13_s7 }
   0x3   :  { %s62_s8 = scalar_lea.vmem %s14_s7, 256  ;;  %p67_p1 = scmp.lt.s32.totalorder %s14_s7, %s14_s7 }
   0x4   :  { %p63_p0 = scmp.ne.s32.totalorder %s14_s7, %s62_s8  ;;  %p68_p2 = scmp.lt.s32.totalorder %s62_s8, %s62_s8 }
   0x6   :  { %p69_p3 = por %p68_p2, %p67_p1 }
   0x8   :  { %p70_p4 = pnand %p69_p3, %p63_p0 }
   0xa   :  { %73 = shalt.err (!%p70_p4)
}
   0xb   :  { %s99_s9 = smov 128   ;;  %s100_s10 = smov 8  }
   0xc   :  { %19 = dma.hbm_to_vmem [thread:$0]  %s118_s0, 256, %s14_s7, [#allocation3], %s99_s9, %s99_s9, %s100_s10  }
   0xd   :  { %94 = dma.done.wait [#allocation3], 256  }
   0xe   :  { %95 = vsyncadd [#allocation3], 4294967040  ;;  %s101_s13 = smov [#allocation5]   ;;  %v23_v0 = vld [vmem:[#allocation2] sm:$0xff]  ;;  %v24_v1 = vld [vmem:[#allocation2 + $0x8] sm:$0xff] }
   0xf   :  { %s38_s14 = sshll.u32 %s101_s13, 4  ;;  %vm25_vm0 = vcmp.gt.f32.partialorder %v23_v0, 0.0  ;;  %v27_v2 = vmul.f32 0.001, %v23_v0  ;;  %vm26_vm1 = vcmp.gt.f32.partialorder %v24_v1, 0.0  ;;  %s39_s14 = int_to_ptr.vmem [resolvable:$true] %s38_s14 }
  0x10   :  { %v28_v3 = vmul.f32 0.001, %v24_v1  ;;  %s74_s15 = scalar_lea.vmem %s39_s14, 256  ;;  %p79_p6 = scmp.lt.s32.totalorder %s39_s14, %s39_s14 }
  0x11   :  { %v29_v4 = vsel %vm25_vm0, %v23_v0, %v27_v2  ;;  %p75_p5 = scmp.ne.s32.totalorder %s39_s14, %s74_s15  ;;  %p80_p7 = scmp.lt.s32.totalorder %s74_s15, %s74_s15 }
  0x12   :  { %v30_v5 = vsel %vm26_vm1, %v24_v1, %v28_v3  ;;  %31 = vst [vmem:[#allocation5] sm:$0xff] %v29_v4 }
  0x13   :  { %32 = vst [vmem:[#allocation5 + $0x8] sm:$0xff] %v30_v5  ;;  %p81_p8 = por %p80_p7, %p79_p6 }
  0x15   :  { %p82_p9 = pnand %p81_p8, %p75_p5 }
  0x17   :  { %85 = shalt.err (!%p82_p9)
}
  0x18   :  { %44 = dma.vmem_to_hbm [thread:$0]  %s39_s14, 256, %s119_s1, [#allocation4], %s99_s9, %s99_s9, %s100_s10  }
  0x19   :  { %96 = dma.done.wait [#allocation4], 256  }
  0x1a   :  { %97 = vsyncadd [#allocation4], 4294967040 }
  0x1b   :  { %48 = vsyncpa [#allocation3], 1 }
  0x1c   :  { %49 = vsyncpa [#allocation4], 1 }

</bundles_post_ra>
